<compile_context>
chip_gen: v6e
topology: v6e:2x2x1
jax: 0.10.0
libtpu: 0.0.40
codegen_flags: <defaults>
</compile_context>

<pallas_src>
import functools

import jax
import jax.numpy as jnp
from jax.experimental import pallas as pl
from jax.experimental.pallas import tpu as pltpu

K = 3            # conv kernel_size
PAD = K // 2     # "same" padding (EDSR-style default_conv)
RES_SCALE = 1.0  # ResBlock res_scale


def _senet_kernel(x_ref, mask_ref, w1_ref, b1_ref, w2_ref, b2_ref,
                  ws1_ref, bs1_ref, ws2t_ref, bs2_ref, out_ref,
                  *, n_img, n_lane, wp, inv_hw, conv_dot_dtype):
    """One grid step processes `n_img` zero-padded images.

    x_ref   : (C, n_img*n_lane)  padded images, channels on sublanes, spatial on lanes
    mask_ref: (1, n_lane)        1.0 at interior positions of ONE image, 0.0 elsewhere
    w*_ref  : (C, K*K*C)         fused conv taps, tap-major then cin (conv_dot_dtype)
    b*_ref  : (C, 1)             f32
    ws1_ref : (C, Cr)   bs1_ref: (1, Cr)
    ws2t_ref: (C, Cr)   bs2_ref: (C, 1)
    """
    n_tot = n_img * n_lane
    xp = x_ref[...].astype(jnp.float32)                 # (C, N) dense lane layout
    mask1 = mask_ref[...].astype(jnp.float32)           # (1, n_lane)
    # replicate the per-image mask across the images in this block (cheap lane concat)
    mask = mask1 if n_img == 1 else jnp.concatenate([mask1] * n_img, axis=1)

    def im2row(inp):
        # Stack the 9 tap-shifted views along the sublane axis -> (9*C, N).
        # Lane rolls with wraparound are safe here: wrapped / cross-image samples only
        # ever contribute to pad-ring output positions, which `mask` re-zeroes.
        taps = []
        for kh in range(K):
            for kw in range(K):
                s = (kh - PAD) * wp + (kw - PAD)
                taps.append(inp if s == 0
                            else pltpu.roll(inp, shift=(-s) % n_tot, axis=1))
        return jnp.concatenate(taps, axis=0)

    def conv3x3(inp, w_ref, b_ref):
        # cast BEFORE the rolls/concat so the XLU moves narrow operands (perf review)
        xs = im2row(inp.astype(conv_dot_dtype))
        # single fused matmul per conv, f32 accumulation; bias stays f32
        return jnp.dot(w_ref[...], xs, preferred_element_type=jnp.float32) + b_ref[...]

    # ---- ResBlock: conv -> ReLU -> conv, *res_scale, + x, ReLU ----
    h = jnp.maximum(conv3x3(xp, w1_ref, b1_ref), 0.0) * mask   # re-zero pad ring for conv2
    h = conv3x3(h, w2_ref, b2_ref)
    xr = jnp.maximum(h * RES_SCALE + xp, 0.0) * mask           # pad ring zeroed for pooling

    ws1 = ws1_ref[...]
    bs1 = bs1_ref[...]
    ws2t = ws2t_ref[...]
    bs2 = bs2_ref[...]

    for b in range(n_img):                                     # unrolled; n_img is tiny
        lo, hi = b * n_lane, (b + 1) * n_lane                  # 128-aligned static slices
        xr_b = xr[:, lo:hi]
        xp_b = xp[:, lo:hi]
        # squeeze: global average pool over the H*W interior positions
        y = jnp.sum(xr_b, axis=1, keepdims=True) * inv_hw      # (C, 1)
        # excitation MLP on VPU/XLU (M=1: an MXU round trip here is pure latency)
        z = jnp.maximum(jnp.sum(ws1 * y, axis=0, keepdims=True) + bs1, 0.0)   # (1, Cr)
        logits = jnp.sum(ws2t * z, axis=1, keepdims=True) + bs2               # (C, 1)
        gate = jax.nn.sigmoid(logits)                                         # (C, 1)
        # write each image's result directly (no epilogue concatenate), unmasked stores
        out_ref[:, lo:hi] = (xr_b * gate + xp_b).astype(out_ref.dtype)


def _tensorcores_per_device():
    """Static (trace-time) guess of TensorCores per JAX device. Perf-only decision."""
    try:
        kind = jax.devices()[0].device_kind.lower()
    except Exception:  # pragma: no cover - non-TPU fallback
        return 1
    # v2/v3 expose one core per device; v5e/v6e ("lite" family) are single-TC chips.
    if any(tag in kind for tag in ("v2", "v3", "lite", "v5e", "v6e")):
        return 1
    # v4/v5p megacore and v7x dual-TC devices can shard a "parallel" grid axis.
    return 2


@functools.partial(jax.jit, static_argnames=("g", "conv_dot_dtype"))
def _senet_forward_impl(x_nchw, params, g, conv_dot_dtype):
    w1, b1, w2, b2, ws1, bs1, ws2, bs2 = params
    B, C, H, W = x_nchw.shape
    Hp, Wp = H + 2 * PAD, W + 2 * PAD
    Npad = Hp * Wp
    # lane-dense per-image extent: round up to a multiple of 128 (unmasked stores/DMAs)
    Nlane = ((Npad + 127) // 128) * 128
    Cr = ws1.shape[1]

    # roll-wraparound-into-pad-ring invariant is only validated for the 3x3 / pad=1 case
    assert K == 3 and PAD == 1, "lane-roll im2row trick assumes kernel_size=3, pad=1"
    assert B % g == 0
    Bt = B // g
    Nblk = Bt * Nlane

    # glue: NCHW -> zero-pad spatially -> channels-on-sublane (C, B*Nlane)
    xpad = jnp.pad(x_nchw, ((0, 0), (0, 0), (PAD, PAD), (PAD, PAD)))
    x_cbn = jnp.transpose(xpad, (1, 0, 2, 3)).reshape(C, B, Npad)
    if Nlane != Npad:
        x_cbn = jnp.pad(x_cbn, ((0, 0), (0, 0), (0, Nlane - Npad)))
    x_cn = x_cbn.reshape(C, B * Nlane)

    # interior (non-padding) mask for ONE image; replicated in-kernel across the block
    rr = (jnp.arange(Hp) >= PAD) & (jnp.arange(Hp) < PAD + H)
    cc = (jnp.arange(Wp) >= PAD) & (jnp.arange(Wp) < PAD + W)
    mask = (rr[:, None] & cc[None, :]).astype(jnp.float32).reshape(1, Npad)
    if Nlane != Npad:
        mask = jnp.pad(mask, ((0, 0), (0, Nlane - Npad)))

    # glue: conv weights OIHW -> (Cout, K*K*Cin), tap-major to match im2row stacking;
    # pre-cast to the MXU operand dtype once (not per grid step)
    w1_f = jnp.transpose(w1, (0, 2, 3, 1)).reshape(C, K * K * C).astype(conv_dot_dtype)
    w2_f = jnp.transpose(w2, (0, 2, 3, 1)).reshape(C, K * K * C).astype(conv_dot_dtype)

    kernel = functools.partial(_senet_kernel, n_img=Bt, n_lane=Nlane, wp=Wp,
                               inv_hw=1.0 / float(H * W),
                               conv_dot_dtype=conv_dot_dtype)

    def full(shape):  # whole-array block, same for every grid step
        return pl.BlockSpec(shape, lambda gg: (0, 0))

    out_cn = pl.pallas_call(
        kernel,
        out_shape=jax.ShapeDtypeStruct((C, B * Nlane), x_nchw.dtype),
        grid_spec=pltpu.PrefetchScalarGridSpec(
            num_scalar_prefetch=0,
            grid=(g,),
            in_specs=[
                pl.BlockSpec((C, Nblk), lambda gg: (0, gg)),   # x
                full((1, Nlane)),                              # per-image interior mask
                full((C, K * K * C)), full((C, 1)),            # conv1 w, b
                full((C, K * K * C)), full((C, 1)),            # conv2 w, b
                full((C, Cr)), full((1, Cr)),                  # SE linear1 w, b
                full((C, Cr)), full((C, 1)),                   # SE linear2 w^T, b
            ],
            out_specs=pl.BlockSpec((C, Nblk), lambda gg: (0, gg)),
        ),
        compiler_params=pltpu.CompilerParams(
            dimension_semantics=("parallel",)),
        # TODO(synk): at realistic H/W/C add a row-tiled grid axis (1-row halo) and set
        # vmem_limit_bytes explicitly; tiles on v7x should be ~half the v6e size.
    )(x_cn, mask, w1_f, b1.reshape(C, 1), w2_f, b2.reshape(C, 1),
      ws1, bs1.reshape(1, Cr), jnp.transpose(ws2), bs2.reshape(C, 1))

    # glue: drop the lane padding + pad ring, back to NCHW
    out = out_cn.reshape(C, B, Nlane)[:, :, :Npad].reshape(C, B, Hp, Wp)
    out = out[:, :, PAD:PAD + H, PAD:PAD + W]
    return jnp.transpose(out, (1, 0, 2, 3))


def senet_forward(x_nchw, params, conv_dot_dtype=jnp.float32):
    """SENet forward. Accepts / returns NCHW to match the PyTorch module.

    Batch folding is chip-dependent: one grid step on single-TC chips (v5e/v6e),
    two "parallel" grid steps on dual-TC chips (v4/v5p/v7x) so both cores are used.
    """
    B = x_nchw.shape[0]
    g = 2 if (_tensorcores_per_device() >= 2 and B >= 2 and B % 2 == 0) else 1
    return _senet_forward_impl(x_nchw, params, g=g, conv_dot_dtype=conv_dot_dtype)


def senet_reference(x, params):
    """Pure-JAX reference matching the PyTorch forward semantics (NCHW)."""
    w1, b1, w2, b2, ws1, bs1, ws2, bs2 = params

    def conv(h, w, b):
        return jax.lax.conv_general_dilated(
            h, w, (1, 1), [(PAD, PAD), (PAD, PAD)],
            dimension_numbers=('NCHW', 'OIHW', 'NCHW')) + b[None, :, None, None]

    h = jax.nn.relu(conv(x, w1, b1))
    h = conv(h, w2, b2)
    xr = jax.nn.relu(h * RES_SCALE + x)
    y = xr.mean(axis=(2, 3))                                     # global avg pool
    s = jax.nn.sigmoid(jax.nn.relu(y @ ws1 + bs1) @ ws2 + bs2)   # SE MLP
    return xr * s[:, :, None, None] + x


if __name__ == "__main__":
    # Shapes consistent with the module: B=2, in_feats=out_feats=8,
    # square spatial 14x14 (required by AvgPool2d(H)), reduce=4 -> hidden=2.
    B, C, H, W = 2, 8, 14, 14
    reduce = 4
    Cr = C // reduce

    key = jax.random.PRNGKey(0)
    keys = jax.random.split(key, 9)
    scale = 0.1
    w1 = jax.random.normal(keys[0], (C, C, K, K), jnp.float32) * scale   # OIHW
    b1 = jax.random.normal(keys[1], (C,), jnp.float32) * scale
    w2 = jax.random.normal(keys[2], (C, C, K, K), jnp.float32) * scale   # OIHW
    b2 = jax.random.normal(keys[3], (C,), jnp.float32) * scale
    ws1 = jax.random.normal(keys[4], (C, Cr), jnp.float32) * scale       # (in, out)
    bs1 = jax.random.normal(keys[5], (Cr,), jnp.float32) * scale
    ws2 = jax.random.normal(keys[6], (Cr, C), jnp.float32) * scale       # (in, out)
    bs2 = jax.random.normal(keys[7], (C,), jnp.float32) * scale
    x = jax.random.normal(keys[8], (B, C, H, W), jnp.float32)
    params = (w1, b1, w2, b2, ws1, bs1, ws2, bs2)

    ref = senet_reference(x, params)

    # default path: f32 MXU operands (matches the f32 PyTorch module), tight tolerance
    out_f32 = jax.block_until_ready(senet_forward(x, params))
    assert out_f32.shape == (B, C, H, W), out_f32.shape
    err32 = float(jnp.max(jnp.abs(out_f32 - ref)))
    assert jnp.allclose(out_f32, ref, atol=1e-4, rtol=1e-4), f"f32 max abs err {err32}"

    # opt-in fast path: bf16 MXU operands, f32 accumulation (looser tolerance)
    out_bf16 = jax.block_until_ready(
        senet_forward(x, params, conv_dot_dtype=jnp.bfloat16))
    errbf = float(jnp.max(jnp.abs(out_bf16 - ref)))
    assert jnp.allclose(out_bf16, ref, atol=1e-1, rtol=1e-1), f"bf16 max abs err {errbf}"

    print("KERNEL_OK")
</pallas_src>

<mosaic_0001>
module attributes {stable_mosaic.version = 11 : i64} {
  func.func @_senet_kernel(%arg0: i32, %arg1: memref<8x256xf32, #tpu.memory_space<vmem>>, %arg2: memref<1x256xf32, #tpu.memory_space<vmem>>, %arg3: memref<8x72xf32, #tpu.memory_space<vmem>>, %arg4: memref<8x1xf32, #tpu.memory_space<vmem>>, %arg5: memref<8x72xf32, #tpu.memory_space<vmem>>, %arg6: memref<8x1xf32, #tpu.memory_space<vmem>>, %arg7: memref<8x2xf32, #tpu.memory_space<vmem>>, %arg8: memref<1x2xf32, #tpu.memory_space<vmem>>, %arg9: memref<8x2xf32, #tpu.memory_space<vmem>>, %arg10: memref<8x1xf32, #tpu.memory_space<vmem>>, %arg11: memref<8x256xf32, #tpu.memory_space<vmem>>) attributes {dimension_semantics = [#tpu.dimension_semantics<parallel>], iteration_bounds = array<i64: 2>, scalar_prefetch = 0 : i64, scratch_operands = 0 : i64, tpu.core_type = #tpu.core_type<tc>, window_params = [{transform_indices = @transform_0, window_bounds = array<i64: 8, 256>}, {pipeline_mode = #tpu.pipeline_mode<synchronous>, transform_indices = @transform_1, window_bounds = array<i64: 1, 256>}, {pipeline_mode = #tpu.pipeline_mode<synchronous>, transform_indices = @transform_2, window_bounds = array<i64: 8, 72>}, {pipeline_mode = #tpu.pipeline_mode<synchronous>, transform_indices = @transform_3, window_bounds = array<i64: 8, 1>}, {pipeline_mode = #tpu.pipeline_mode<synchronous>, transform_indices = @transform_4, window_bounds = array<i64: 8, 72>}, {pipeline_mode = #tpu.pipeline_mode<synchronous>, transform_indices = @transform_5, window_bounds = array<i64: 8, 1>}, {pipeline_mode = #tpu.pipeline_mode<synchronous>, transform_indices = @transform_6, window_bounds = array<i64: 8, 2>}, {pipeline_mode = #tpu.pipeline_mode<synchronous>, transform_indices = @transform_7, window_bounds = array<i64: 1, 2>}, {pipeline_mode = #tpu.pipeline_mode<synchronous>, transform_indices = @transform_8, window_bounds = array<i64: 8, 2>}, {pipeline_mode = #tpu.pipeline_mode<synchronous>, transform_indices = @transform_9, window_bounds = array<i64: 8, 1>}, {transform_indices = @transform_10, window_bounds = array<i64: 8, 256>}]} {
    %c0 = arith.constant 0 : index
    %c0_0 = arith.constant 0 : index
    %0 = vector.load %arg1[%c0, %c0_0] : memref<8x256xf32, #tpu.memory_space<vmem>>, vector<8x256xf32>
    %c0_1 = arith.constant 0 : index
    %c0_2 = arith.constant 0 : index
    %1 = vector.load %arg2[%c0_1, %c0_2] : memref<1x256xf32, #tpu.memory_space<vmem>>, vector<1x256xf32>
    %c17_i32 = arith.constant 17 : i32
    %2 = tpu.dynamic_rotate %0 by %c17_i32 dim 1 : vector<8x256xf32>, i32 -> vector<8x256xf32>
    %c16_i32 = arith.constant 16 : i32
    %3 = tpu.dynamic_rotate %0 by %c16_i32 dim 1 : vector<8x256xf32>, i32 -> vector<8x256xf32>
    %c15_i32 = arith.constant 15 : i32
    %4 = tpu.dynamic_rotate %0 by %c15_i32 dim 1 : vector<8x256xf32>, i32 -> vector<8x256xf32>
    %c1_i32 = arith.constant 1 : i32
    %5 = tpu.dynamic_rotate %0 by %c1_i32 dim 1 : vector<8x256xf32>, i32 -> vector<8x256xf32>
    %c255_i32 = arith.constant 255 : i32
    %6 = tpu.dynamic_rotate %0 by %c255_i32 dim 1 : vector<8x256xf32>, i32 -> vector<8x256xf32>
    %c241_i32 = arith.constant 241 : i32
    %7 = tpu.dynamic_rotate %0 by %c241_i32 dim 1 : vector<8x256xf32>, i32 -> vector<8x256xf32>
    %c240_i32 = arith.constant 240 : i32
    %8 = tpu.dynamic_rotate %0 by %c240_i32 dim 1 : vector<8x256xf32>, i32 -> vector<8x256xf32>
    %c239_i32 = arith.constant 239 : i32
    %9 = tpu.dynamic_rotate %0 by %c239_i32 dim 1 : vector<8x256xf32>, i32 -> vector<8x256xf32>
    %10 = tpu.concatenate %2, %3, %4, %5, %0, %6, %7, %8, %9 in 0 : vector<8x256xf32>, vector<8x256xf32>, vector<8x256xf32>, vector<8x256xf32>, vector<8x256xf32>, vector<8x256xf32>, vector<8x256xf32>, vector<8x256xf32>, vector<8x256xf32> -> vector<72x256xf32>
    %c0_3 = arith.constant 0 : index
    %c0_4 = arith.constant 0 : index
    %11 = vector.load %arg3[%c0_3, %c0_4] : memref<8x72xf32, #tpu.memory_space<vmem>>, vector<8x72xf32>
    %cst = arith.constant dense<0.000000e+00> : vector<8x256xf32>
    %12 = tpu.matmul %11, %10, %cst {dimension_numbers = #tpu.dot_dimension_numbers<[1], [0], [0], [1], [0, 0, 1, 1], [], []>} : vector<8x72xf32>, vector<72x256xf32>, vector<8x256xf32> -> vector<8x256xf32>
    %c0_5 = arith.constant 0 : index
    %c0_6 = arith.constant 0 : index
    %13 = vector.load %arg4[%c0_5, %c0_6] : memref<8x1xf32, #tpu.memory_space<vmem>>, vector<8x1xf32>
    %14 = vector.broadcast %13 : vector<8x1xf32> to vector<8x256xf32>
    %15 = arith.addf %12, %14 : vector<8x256xf32>
    %cst_7 = arith.constant 0.000000e+00 : f32
    %16 = vector.broadcast %cst_7 : f32 to vector<8x256xf32>
    %17 = arith.maximumf %15, %16 : vector<8x256xf32>
    %18 = vector.broadcast %1 : vector<1x256xf32> to vector<8x256xf32>
    %19 = arith.mulf %17, %18 : vector<8x256xf32>
    %c17_i32_8 = arith.constant 17 : i32
    %20 = tpu.dynamic_rotate %19 by %c17_i32_8 dim 1 : vector<8x256xf32>, i32 -> vector<8x256xf32>
    %c16_i32_9 = arith.constant 16 : i32
    %21 = tpu.dynamic_rotate %19 by %c16_i32_9 dim 1 : vector<8x256xf32>, i32 -> vector<8x256xf32>
    %c15_i32_10 = arith.constant 15 : i32
    %22 = tpu.dynamic_rotate %19 by %c15_i32_10 dim 1 : vector<8x256xf32>, i32 -> vector<8x256xf32>
    %c1_i32_11 = arith.constant 1 : i32
    %23 = tpu.dynamic_rotate %19 by %c1_i32_11 dim 1 : vector<8x256xf32>, i32 -> vector<8x256xf32>
    %c255_i32_12 = arith.constant 255 : i32
    %24 = tpu.dynamic_rotate %19 by %c255_i32_12 dim 1 : vector<8x256xf32>, i32 -> vector<8x256xf32>
    %c241_i32_13 = arith.constant 241 : i32
    %25 = tpu.dynamic_rotate %19 by %c241_i32_13 dim 1 : vector<8x256xf32>, i32 -> vector<8x256xf32>
    %c240_i32_14 = arith.constant 240 : i32
    %26 = tpu.dynamic_rotate %19 by %c240_i32_14 dim 1 : vector<8x256xf32>, i32 -> vector<8x256xf32>
    %c239_i32_15 = arith.constant 239 : i32
    %27 = tpu.dynamic_rotate %19 by %c239_i32_15 dim 1 : vector<8x256xf32>, i32 -> vector<8x256xf32>
    %28 = tpu.concatenate %20, %21, %22, %23, %19, %24, %25, %26, %27 in 0 : vector<8x256xf32>, vector<8x256xf32>, vector<8x256xf32>, vector<8x256xf32>, vector<8x256xf32>, vector<8x256xf32>, vector<8x256xf32>, vector<8x256xf32>, vector<8x256xf32> -> vector<72x256xf32>
    %c0_16 = arith.constant 0 : index
    %c0_17 = arith.constant 0 : index
    %29 = vector.load %arg5[%c0_16, %c0_17] : memref<8x72xf32, #tpu.memory_space<vmem>>, vector<8x72xf32>
    %cst_18 = arith.constant dense<0.000000e+00> : vector<8x256xf32>
    %30 = tpu.matmul %29, %28, %cst_18 {dimension_numbers = #tpu.dot_dimension_numbers<[1], [0], [0], [1], [0, 0, 1, 1], [], []>} : vector<8x72xf32>, vector<72x256xf32>, vector<8x256xf32> -> vector<8x256xf32>
    %c0_19 = arith.constant 0 : index
    %c0_20 = arith.constant 0 : index
    %31 = vector.load %arg6[%c0_19, %c0_20] : memref<8x1xf32, #tpu.memory_space<vmem>>, vector<8x1xf32>
    %32 = vector.broadcast %31 : vector<8x1xf32> to vector<8x256xf32>
    %33 = arith.addf %30, %32 : vector<8x256xf32>
    %cst_21 = arith.constant 1.000000e+00 : f32
    %34 = vector.broadcast %cst_21 : f32 to vector<8x256xf32>
    %35 = arith.mulf %33, %34 : vector<8x256xf32>
    %36 = arith.addf %35, %0 : vector<8x256xf32>
    %cst_22 = arith.constant 0.000000e+00 : f32
    %37 = vector.broadcast %cst_22 : f32 to vector<8x256xf32>
    %38 = arith.maximumf %36, %37 : vector<8x256xf32>
    %39 = vector.broadcast %1 : vector<1x256xf32> to vector<8x256xf32>
    %40 = arith.mulf %38, %39 : vector<8x256xf32>
    %c0_23 = arith.constant 0 : index
    %c0_24 = arith.constant 0 : index
    %41 = vector.load %arg7[%c0_23, %c0_24] : memref<8x2xf32, #tpu.memory_space<vmem>>, vector<8x2xf32>
    %c0_25 = arith.constant 0 : index
    %c0_26 = arith.constant 0 : index
    %42 = vector.load %arg8[%c0_25, %c0_26] : memref<1x2xf32, #tpu.memory_space<vmem>>, vector<1x2xf32>
    %c0_27 = arith.constant 0 : index
    %c0_28 = arith.constant 0 : index
    %43 = vector.load %arg9[%c0_27, %c0_28] : memref<8x2xf32, #tpu.memory_space<vmem>>, vector<8x2xf32>
    %c0_29 = arith.constant 0 : index
    %c0_30 = arith.constant 0 : index
    %44 = vector.load %arg10[%c0_29, %c0_30] : memref<8x1xf32, #tpu.memory_space<vmem>>, vector<8x1xf32>
    %cst_31 = arith.constant dense<0.000000e+00> : vector<8xf32>
    %45 = vector.multi_reduction <add>, %40, %cst_31 [1] : vector<8x256xf32> to vector<8xf32>
    %46 = vector.shape_cast %45 : vector<8xf32> to vector<8x1xf32>
    %cst_32 = arith.constant 0.00510204071 : f32
    %47 = vector.broadcast %cst_32 : f32 to vector<8x1xf32>
    %48 = arith.mulf %46, %47 : vector<8x1xf32>
    %49 = vector.broadcast %48 : vector<8x1xf32> to vector<8x2xf32>
    %50 = arith.mulf %41, %49 : vector<8x2xf32>
    %cst_33 = arith.constant dense<0.000000e+00> : vector<2xf32>
    %51 = vector.multi_reduction <add>, %50, %cst_33 [0] : vector<8x2xf32> to vector<2xf32>
    %52 = vector.shape_cast %51 : vector<2xf32> to vector<1x2xf32>
    %53 = arith.addf %52, %42 : vector<1x2xf32>
    %cst_34 = arith.constant 0.000000e+00 : f32
    %54 = vector.broadcast %cst_34 : f32 to vector<1x2xf32>
    %55 = arith.maximumf %53, %54 : vector<1x2xf32>
    %56 = vector.broadcast %55 : vector<1x2xf32> to vector<8x2xf32>
    %57 = arith.mulf %43, %56 : vector<8x2xf32>
    %cst_35 = arith.constant dense<0.000000e+00> : vector<8xf32>
    %58 = vector.multi_reduction <add>, %57, %cst_35 [1] : vector<8x2xf32> to vector<8xf32>
    %59 = vector.shape_cast %58 : vector<8xf32> to vector<8x1xf32>
    %60 = arith.addf %59, %44 : vector<8x1xf32>
    %61 = arith.negf %60 : vector<8x1xf32>
    %62 = math.exp %61 : vector<8x1xf32>
    %cst_36 = arith.constant 1.000000e+00 : f32
    %63 = vector.broadcast %cst_36 : f32 to vector<8x1xf32>
    %64 = arith.addf %63, %62 : vector<8x1xf32>
    %65 = arith.divf %63, %64 : vector<8x1xf32>
    %66 = vector.broadcast %65 : vector<8x1xf32> to vector<8x256xf32>
    %67 = arith.mulf %40, %66 : vector<8x256xf32>
    %68 = arith.addf %67, %0 : vector<8x256xf32>
    %c0_37 = arith.constant 0 : index
    %c0_38 = arith.constant 0 : index
    %69 = vector.load %arg11[%c0_37, %c0_38] : memref<8x256xf32, #tpu.memory_space<vmem>>, vector<8x256xf32>
    tpu.vector_store %arg11[%c0_37, %c0_38], %68 {strides = array<i32>} : memref<8x256xf32, #tpu.memory_space<vmem>>, vector<8x256xf32>,
    return
  }
  func.func @transform_0(%arg0: i32) -> (i32, i32) {
    %c0_i32 = arith.constant 0 : i32
    %c0_i32_0 = arith.constant 0 : i32
    return %c0_i32, %arg0 : i32, i32
  }
  func.func @transform_1(%arg0: i32) -> (i32, i32) {
    %c0_i32 = arith.constant 0 : i32
    %c0_i32_0 = arith.constant 0 : i32
    %c0_i32_1 = arith.constant 0 : i32
    return %c0_i32, %c0_i32_0 : i32, i32
  }
  func.func @transform_2(%arg0: i32) -> (i32, i32) {
    %c0_i32 = arith.constant 0 : i32
    %c0_i32_0 = arith.constant 0 : i32
    %c0_i32_1 = arith.constant 0 : i32
    return %c0_i32, %c0_i32_0 : i32, i32
  }
  func.func @transform_3(%arg0: i32) -> (i32, i32) {
    %c0_i32 = arith.constant 0 : i32
    %c0_i32_0 = arith.constant 0 : i32
    %c0_i32_1 = arith.constant 0 : i32
    return %c0_i32, %c0_i32_0 : i32, i32
  }
  func.func @transform_4(%arg0: i32) -> (i32, i32) {
    %c0_i32 = arith.constant 0 : i32
    %c0_i32_0 = arith.constant 0 : i32
    %c0_i32_1 = arith.constant 0 : i32
    return %c0_i32, %c0_i32_0 : i32, i32
  }
  func.func @transform_5(%arg0: i32) -> (i32, i32) {
    %c0_i32 = arith.constant 0 : i32
    %c0_i32_0 = arith.constant 0 : i32
    %c0_i32_1 = arith.constant 0 : i32
    return %c0_i32, %c0_i32_0 : i32, i32
  }
  func.func @transform_6(%arg0: i32) -> (i32, i32) {
    %c0_i32 = arith.constant 0 : i32
    %c0_i32_0 = arith.constant 0 : i32
    %c0_i32_1 = arith.constant 0 : i32
    return %c0_i32, %c0_i32_0 : i32, i32
  }
  func.func @transform_7(%arg0: i32) -> (i32, i32) {
    %c0_i32 = arith.constant 0 : i32
    %c0_i32_0 = arith.constant 0 : i32
    %c0_i32_1 = arith.constant 0 : i32
    return %c0_i32, %c0_i32_0 : i32, i32
  }
  func.func @transform_8(%arg0: i32) -> (i32, i32) {
    %c0_i32 = arith.constant 0 : i32
    %c0_i32_0 = arith.constant 0 : i32
    %c0_i32_1 = arith.constant 0 : i32
    return %c0_i32, %c0_i32_0 : i32, i32
  }
  func.func @transform_9(%arg0: i32) -> (i32, i32) {
    %c0_i32 = arith.constant 0 : i32
    %c0_i32_0 = arith.constant 0 : i32
    %c0_i32_1 = arith.constant 0 : i32
    return %c0_i32, %c0_i32_0 : i32, i32
  }
  func.func @transform_10(%arg0: i32) -> (i32, i32) {
    %c0_i32 = arith.constant 0 : i32
    %c0_i32_0 = arith.constant 0 : i32
    return %c0_i32, %arg0 : i32, i32
  }
}

</mosaic_0001>

<bundles_post_ra>
// kernel: _senet_forward_impl.1
= control target key start
LH: loop header
LB: loop body
LE: loop exit
PB: predicated region body
PF: predicated region fallthrough
CT: control target
= control target key end

     0   :  { %s867_s13 = smov 0   ;;  %s1070_s0 = inlined_call_operand.vmem [shape: f32[8,512], index: 0, kind: input, shape index: {}]   ;;  %s1071_s1 = inlined_call_operand.vmem [shape: f32[1,256], index: 1, kind: input, shape index: {}]   ;;  %s1072_s2 = inlined_call_operand.vmem [shape: f32[8,72], index: 2, kind: input, shape index: {}]   ;;  %s1073_s3 = inlined_call_operand.vmem [shape: f32[8,1], index: 3, kind: input, shape index: {}]   ;;  %s1074_s4 = inlined_call_operand.vmem [shape: f32[8,72], index: 4, kind: input, shape index: {}]   ;;  %s1075_s5 = inlined_call_operand.vmem [shape: f32[8,1], index: 5, kind: input, shape index: {}]   ;;  %s1076_s6 = inlined_call_operand.vmem [shape: f32[8,2], index: 6, kind: input, shape index: {}]   ;;  %s1077_s7 = inlined_call_operand.vmem [shape: f32[1,2], index: 7, kind: input, shape index: {}]   ;;  %s1078_s8 = inlined_call_operand.vmem [shape: f32[8,2], index: 8, kind: input, shape index: {}]   ;;  %s1079_s9 = inlined_call_operand.vmem [shape: f32[8,1], index: 9, kind: input, shape index: {}]   ;;  %s1080_s10 = inlined_call_operand.vmem [shape: f32[8,512], index: 10, kind: output, shape index: {}]  }
   0x1 LB: > { %s757_s14 = sadd.s32 4294967295, %s800_s13   ;;  %p761_p0 = scmp.ge.s32.totalorder %s800_s13, 1  ;;  %s800_s13 = sphi %s867_s13, %s20_s13  }
   0x2   : > { %p313_p1 = scmp.lt.s32.totalorder %s800_s13, 3 }
   0x4   : > { %p314_p2 = pnand %p761_p0, %p313_p1 }
   0x5   : > { %s762_s15 = sshll.u32 (!%p314_p2), %s757_s14, 1  ;;  %s802_s20 = smov (!%p314_p2), 112  }
   0x6   : > { %317 = sbr.rel (%p314_p2) target bundleno = 1180 (0x49c), region = 60  ;;  %p352_p3 = scmp.lt.s32.totalorder (!%p314_p2), %s762_s15, 3 }
   0x7   : > { %s803_s21 = smov (!%p314_p2), 111   ;;  %s804_s22 = smov (!%p314_p2), 113  }
   0x8   : > { %s805_s23 = smov (!%p314_p2), 127   ;;  %s806_s24 = smov (!%p314_p2), 1  }
   0x9   : > { %s809_s25 = smov (!%p314_p2), 15   ;;  %s810_s26 = smov (!%p314_p2), 16  }
   0xa   : > { %s811_s27 = smov (!%p314_p2), 17  }
   0xb   : > { %s1082_s15 = smov (!%p352_p3, %s762_s15), 3  ;;  %v807_v2 = vmov 0.0   ;;  %v808_v3 = vmov 0   ;;  %v425_v4 = vld [vmem:[%s1073_s3] sm:$0xff]  ;;  %v370_v5 = vlaneseq  ;;  %vm431_vm8 = vcmask 588800  }
   0xc   : > { %s763_s16 = sshll.u32 %s1082_s15, 3  ;;  %499 = vmatprep.mubr.f32.mxu0 %v807_v2  ;;  %643 = vmatprep.mubr.f32.mxu1 %v807_v2  ;;  %v424_v39 = vld [vmem:[%s1072_s2] sm:$0xff]  ;;  %vm665_vm9 = vcmask 15360  }
   0xd   : > { %s355_s19 = scalar_lea.vmem %s1070_s0, %s763_s16  ;;  %789 = vset.pattern.permute.xlu0 %v808_v3  ;;  %v923_v6 = vand.u32 127, %v370_v5  ;;  %v972_v40 = vshrl.u32 %v370_v5, 7  ;;  %v365_v42 = vld [vmem:[%s1071_s1] sm:$0x3]  ;;  %s361_s11 = scalar_lea.vmem %s1080_s10, %s763_s16 }
   0xe   : > { %v883_v0 = vld [vmem:[%s355_s19] sm:$0xff]  ;;  %v889_v1 = vld [vmem:[%s355_s19 + $0x8] sm:$0xff] }
   0xf   : > { %410 = vrot.lane.b32.xlu1 %v883_v0, %s802_s20  ;;  %417 = vrot.lane.b32.xlu0 %v883_v0, %s803_s21  ;;  %vm421_vm0 = vcmp.lt.s32.totalorder %v923_v6, 111  ;;  %vm414_vm1 = vcmp.lt.s32.totalorder %v923_v6, 112  ;;  %vm407_vm2 = vcmp.lt.s32.totalorder %v923_v6, 113  ;;  %vm400_vm3 = vcmp.lt.s32.totalorder %v923_v6, 127  ;;  %v570_v55 = vld [vmem:[%s1075_s5] sm:$0xff] }
  0x10   : > { %vm393_vm4 = vcmp.lt.s32.totalorder %v923_v6, 1  ;;  %vm386_vm5 = vcmp.lt.s32.totalorder %v923_v6, 15  ;;  %vm379_vm6 = vcmp.lt.s32.totalorder %v923_v6, 16  ;;  %vm372_vm7 = vcmp.lt.s32.totalorder %v923_v6, 17 }
  0x11   : > { %v511_v41 = vsub.s32 0, %v972_v40  ;;  %v515_v47 = vsub.s32 1, %v972_v40 }
  0x13   : > { %412 = vrot.lane.b32.xlu1 %v889_v1, %s802_s20  ;;  %419 = vrot.lane.b32.xlu0 %v889_v1, %s803_s21  ;;  %v980_v45 = vrot.slane %v365_v42, %v511_v41  ;;  %v984_v53 = vrot.slane %v365_v42, %v515_v47 }
  0x17   : > { %405 = vrot.lane.b32.xlu1 %v889_v1, %s804_s22  ;;  %403 = vrot.lane.b32.xlu0 %v883_v0, %s804_s22 }
  0x1b   : > { %398 = vrot.lane.b32.xlu1 %v889_v1, %s805_s23  ;;  %396 = vrot.lane.b32.xlu0 %v883_v0, %s805_s23 }
  0x1f   : > { %391 = vrot.lane.b32.xlu1 %v889_v1, %s806_s24  ;;  %389 = vrot.lane.b32.xlu0 %v883_v0, %s806_s24 }
  0x23   : > { %384 = vrot.lane.b32.xlu1 %v889_v1, %s809_s25  ;;  %382 = vrot.lane.b32.xlu0 %v883_v0, %s809_s25 }
  0x27   : > { %377 = vrot.lane.b32.xlu1 %v889_v1, %s810_s26  ;;  %375 = vrot.lane.b32.xlu0 %v883_v0, %s810_s26 }
  0x2b   : > { %368 = vrot.lane.b32.xlu1 %v889_v1, %s811_s27  ;;  %366 = vrot.lane.b32.xlu0 %v883_v0, %s811_s27 }
  0x2f   : > { %428 = vperm.xlu0 %789, %v425_v4  }
  0x81   : > { %v411_v7 = vpop.permute.xlu1 %410  ;;  %v418_v8 = vpop.permute.xlu0 %417 }
  0x85   : > { %v413_v9 = vpop.permute.xlu1 %412  ;;  %v420_v10 = vpop.permute.xlu0 %419 }
  0x86   : > { %v423_v11 = vsel %vm421_vm0, %v420_v10, %v418_v8  ;;  %v422_v12 = vsel %vm421_vm0, %v418_v8, %v420_v10  ;;  %v416_v13 = vsel %vm414_vm1, %v413_v9, %v411_v7  ;;  %v415_v16 = vsel %vm414_vm1, %v411_v7, %v413_v9 }
  0x87   : > { %449 = vmatprep.subr.mxu0 %v423_v11 }
  0x88   : > { %450 = vmatpush1.msra.mxu0 %v422_v12 }
  0x89   : > { %v406_v14 = vpop.permute.xlu1 %405  ;;  %451 = vmatprep.subr.mxu0 %v416_v13  ;;  %v404_v15 = vpop.permute.xlu0 %403 }
  0x8a   : > { %452 = vmatpush1.msra.mxu0 %v415_v16  ;;  %v409_v17 = vsel %vm407_vm2, %v406_v14, %v404_v15  ;;  %v408_v18 = vsel %vm407_vm2, %v404_v15, %v406_v14 }
  0x8b   : > { %453 = vmatprep.subr.mxu0 %v409_v17 }
  0x8c   : > { %454 = vmatpush1.msra.mxu0 %v408_v18 }
  0x8d   : > { %v399_v19 = vpop.permute.xlu1 %398  ;;  %v397_v20 = vpop.permute.xlu0 %396 }
  0x8e   : > { %v402_v21 = vsel %vm400_vm3, %v399_v19, %v397_v20  ;;  %v401_v22 = vsel %vm400_vm3, %v397_v20, %v399_v19 }
  0x8f   : > { %455 = vmatprep.subr.mxu0 %v402_v21 }
  0x90   : > { %456 = vmatpush1.msra.mxu0 %v401_v22 }
  0x91   : > { %v392_v23 = vpop.permute.xlu1 %391  ;;  %457 = vmatprep.subr.mxu0 %v889_v1  ;;  %v390_v24 = vpop.permute.xlu0 %389 }
  0x92   : > { %458 = vmatpush1.msra.mxu0 %v883_v0  ;;  %v394_v25 = vsel %vm393_vm4, %v390_v24, %v392_v23  ;;  %v395_v26 = vsel %vm393_vm4, %v392_v23, %v390_v24 }
  0x93   : > { %459 = vmatprep.subr.mxu0 %v394_v25 }
  0x94   : > { %460 = vmatpush1.msra.mxu0 %v395_v26 }
  0x95   : > { %v385_v27 = vpop.permute.xlu1 %384  ;;  %v383_v28 = vpop.permute.xlu0 %382 }
  0x96   : > { %v387_v29 = vsel %vm386_vm5, %v383_v28, %v385_v27  ;;  %v388_v30 = vsel %vm386_vm5, %v385_v27, %v383_v28  ;;  %v569_v27 = vld [vmem:[%s1074_s4] sm:$0xff] }
  0x97   : > { %461 = vmatprep.subr.mxu0 %v387_v29 }
  0x98   : > { %462 = vmatpush1.msra.mxu0 %v388_v30 }
  0x99   : > { %v378_v31 = vpop.permute.xlu1 %377  ;;  %v376_v32 = vpop.permute.xlu0 %375 }
  0x9a   : > { %v380_v33 = vsel %vm379_vm6, %v376_v32, %v378_v31  ;;  %v381_v34 = vsel %vm379_vm6, %v378_v31, %v376_v32 }
  0x9b   : > { %463 = vmatprep.subr.mxu0 %v380_v33 }
  0x9c   : > { %464 = vmatpush1.msra.mxu0 %v381_v34 }
  0x9d   : > { %v369_v35 = vpop.permute.xlu1 %368  ;;  %v367_v36 = vpop.permute.xlu0 %366 }
  0x9e   : > { %v373_v37 = vsel %vm372_vm7, %v367_v36, %v369_v35  ;;  %v374_v38 = vsel %vm372_vm7, %v369_v35, %v367_v36 }
  0x9f   : > { %465 = vmatprep.subr.mxu0 %v373_v37 }
  0xa0   : > { %466 = vmatpush1.msra.mxu0 %v374_v38 }
  0xa1   : > { %766 = vmatmul.mubr.msk.f32.vlgmr.msra.gmra.mxu0 %vm431_vm8, %v424_v39  ;;  %v656_v39 = vld [vmem:[%s1076_s6] sm:$0xff] }
  0xaa   : > { %v429_v43 = vpop.permute.xlu0 %428 }
 0x161   : > { %v501_v44 = vpop.f32.mrf.mxu0 }
 0x162   : > { %v502_v46 = vadd.f32 %v501_v44, %v429_v43 }
 0x163   : > { %v503_v48 = vpop.f32.mrf.mxu0 }
 0x164   : > { %v506_v49 = vmax.f32 %v502_v46, 0.0  ;;  %v504_v50 = vadd.f32 %v503_v48, %v429_v43 }
 0x166   : > { %v519_v51 = vmul.f32 %v980_v45, %v506_v49  ;;  %v507_v52 = vmax.f32 %v504_v50, 0.0 }
 0x168   : > { %557 = vrot.lane.b32.xlu0 %v519_v51, %s802_s20  ;;  %563 = vrot.lane.b32.xlu1 %v519_v51, %s803_s21  ;;  %v520_v54 = vmul.f32 %v984_v53, %v507_v52 }
 0x16c   : > { %551 = vrot.lane.b32.xlu0 %v519_v51, %s804_s22  ;;  %565 = vrot.lane.b32.xlu1 %v520_v54, %s803_s21 }
 0x170   : > { %545 = vrot.lane.b32.xlu0 %v519_v51, %s805_s23  ;;  %559 = vrot.lane.b32.xlu1 %v520_v54, %s802_s20 }
 0x174   : > { %539 = vrot.lane.b32.xlu0 %v519_v51, %s806_s24  ;;  %553 = vrot.lane.b32.xlu1 %v520_v54, %s804_s22 }
 0x178   : > { %533 = vrot.lane.b32.xlu0 %v519_v51, %s809_s25  ;;  %547 = vrot.lane.b32.xlu1 %v520_v54, %s805_s23 }
 0x17c   : > { %527 = vrot.lane.b32.xlu0 %v519_v51, %s810_s26  ;;  %541 = vrot.lane.b32.xlu1 %v520_v54, %s806_s24 }
 0x180   : > { %521 = vrot.lane.b32.xlu0 %v519_v51, %s811_s27  ;;  %535 = vrot.lane.b32.xlu1 %v520_v54, %s809_s25 }
 0x184   : > { %573 = vperm.xlu0 %789, %v570_v55   ;;  %529 = vrot.lane.b32.xlu1 %v520_v54, %s810_s26  ;;  %v658_v55 = vld [vmem:[%s1078_s8] sm:$0xff] }
 0x188   : > { %523 = vrot.lane.b32.xlu1 %v520_v54, %s811_s27 }
 0x1da   : > { %v558_v56 = vpop.permute.xlu0 %557  ;;  %v564_v57 = vpop.permute.xlu1 %563 }
 0x1de   : > { %v552_v58 = vpop.permute.xlu0 %551  ;;  %v566_v59 = vpop.permute.xlu1 %565 }
 0x1df   : > { %v568_v60 = vsel %vm421_vm0, %v566_v59, %v564_v57  ;;  %v567_v61 = vsel %vm421_vm0, %v564_v57, %v566_v59  ;;  %v659_v59 = vld [vmem:[%s1079_s9] sm:$0xff] }
 0x1e0   : > { %593 = vmatprep.subr.mxu1 %v568_v60 }
 0x1e1   : > { %594 = vmatpush1.msra.mxu1 %v567_v61 }
 0x1e2   : > { %v546_v62 = vpop.permute.xlu0 %545  ;;  %v560_v63 = vpop.permute.xlu1 %559 }
 0x1e3   : > { %v562_v2 = vsel %vm414_vm1, %v560_v63, %v558_v56  ;;  %v561_v3 = vsel %vm414_vm1, %v558_v56, %v560_v63 }
 0x1e4   : > { %595 = vmatprep.subr.mxu1 %v562_v2 }
 0x1e5   : > { %596 = vmatpush1.msra.mxu1 %v561_v3 }
 0x1e6   : > { %v554_v4 = vpop.permute.xlu1 %553  ;;  %v540_v8 = vpop.permute.xlu0 %539 }
 0x1e7   : > { %v556_v5 = vsel %vm407_vm2, %v554_v4, %v552_v58  ;;  %v555_v7 = vsel %vm407_vm2, %v552_v58, %v554_v4 }
 0x1e8   : > { %597 = vmatprep.subr.mxu1 %v556_v5 }
 0x1e9   : > { %598 = vmatpush1.msra.mxu1 %v555_v7 }
 0x1ea   : > { %v548_v9 = vpop.permute.xlu1 %547  ;;  %v534_v12 = vpop.permute.xlu0 %533 }
 0x1eb   : > { %v550_v10 = vsel %vm400_vm3, %v548_v9, %v546_v62  ;;  %v549_v11 = vsel %vm400_vm3, %v546_v62, %v548_v9 }
 0x1ec   : > { %599 = vmatprep.subr.mxu1 %v550_v10 }
 0x1ed   : > { %600 = vmatpush1.msra.mxu1 %v549_v11 }
 0x1ee   : > { %601 = vmatprep.subr.mxu1 %v520_v54  ;;  %v542_v13 = vpop.permute.xlu1 %541  ;;  %v528_v19 = vpop.permute.xlu0 %527 }
 0x1ef   : > { %602 = vmatpush1.msra.mxu1 %v519_v51  ;;  %v543_v14 = vsel %vm393_vm4, %v540_v8, %v542_v13  ;;  %v544_v15 = vsel %vm393_vm4, %v542_v13, %v540_v8 }
 0x1f0   : > { %603 = vmatprep.subr.mxu1 %v543_v14 }
 0x1f1   : > { %604 = vmatpush1.msra.mxu1 %v544_v15 }
 0x1f2   : > { %v536_v16 = vpop.permute.xlu1 %535  ;;  %v522_v23 = vpop.permute.xlu0 %521 }
 0x1f3   : > { %v537_v17 = vsel %vm386_vm5, %v534_v12, %v536_v16  ;;  %v538_v18 = vsel %vm386_vm5, %v536_v16, %v534_v12 }
 0x1f4   : > { %605 = vmatprep.subr.mxu1 %v537_v17 }
 0x1f5   : > { %606 = vmatpush1.msra.mxu1 %v538_v18 }
 0x1f6   : > { %v530_v20 = vpop.permute.xlu1 %529 }
 0x1f7   : > { %v531_v21 = vsel %vm379_vm6, %v528_v19, %v530_v20  ;;  %v532_v22 = vsel %vm379_vm6, %v530_v20, %v528_v19 }
 0x1f8   : > { %607 = vmatprep.subr.mxu1 %v531_v21 }
 0x1f9   : > { %608 = vmatpush1.msra.mxu1 %v532_v22 }
 0x1fa   : > { %v524_v24 = vpop.permute.xlu1 %523 }
 0x1fb   : > { %v525_v25 = vsel %vm372_vm7, %v522_v23, %v524_v24  ;;  %v526_v26 = vsel %vm372_vm7, %v524_v24, %v522_v23 }
 0x1fc   : > { %609 = vmatprep.subr.mxu1 %v525_v25 }
 0x1fd   : > { %610 = vmatpush1.msra.mxu1 %v526_v26 }
 0x1fe   : > { %767 = vmatmul.mubr.msk.f32.vlgmr.msra.gmra.mxu1 %vm431_vm8, %v569_v27 }
 0x1ff   : > { %v574_v28 = vpop.permute.xlu0 %573 }
 0x2be   : > { %v645_v29 = vpop.f32.mrf.mxu1 }
 0x2bf   : > { %v646_v30 = vadd.f32 %v645_v29, %v574_v28 }
 0x2c0   : > { %v647_v31 = vpop.f32.mrf.mxu1 }
 0x2c1   : > { %v650_v32 = vadd.f32 %v646_v30, %v883_v0  ;;  %v648_v33 = vadd.f32 %v647_v31, %v574_v28 }
 0x2c3   : > { %v652_v34 = vmax.f32 %v650_v32, 0.0  ;;  %v651_v35 = vadd.f32 %v648_v33, %v889_v1 }
 0x2c5   : > { %v653_v6 = vmax.f32 %v651_v35, 0.0  ;;  %v654_v36 = vmul.f32 %v652_v34, %v980_v45  ;;  %v657_v45 = vld [vmem:[%s1077_s7] sm:$0x1] }
 0x2c7   : > { %v655_v37 = vmul.f32 %v653_v6, %v984_v53 }
 0x2c9   : > { %v660_v38 = vadd.f32 %v655_v37, %v654_v36 }
 0x2cb   : > { %661 = vadd.xlane.f32.xlu1 %v660_v38 }
 0x354   : > { %v662_v42 = vpop.xlane.xlu1 %661 }
 0x355   : > { %v663_v43 = vmul.f32 0.0051020407, %v662_v42 }
 0x357   : > { %v664_v44 = vmul.f32 %v663_v43, %v656_v39 }
 0x359   : > { %v666_v46 = vsel %vm665_vm9, %v664_v44, 0.0 }
 0x35a   : > { %v667_v47 = vrot.slane %v666_v46, 4 }
 0x35c   : > { %v668_v48 = vadd.f32 %v667_v47, %v666_v46 }
 0x35e   : > { %v669_v49 = vrot.slane %v668_v48, 2 }
 0x360   : > { %v670_v50 = vadd.f32 %v669_v49, %v668_v48 }
 0x362   : > { %v671_v51 = vrot.slane %v670_v50, 1 }
 0x364   : > { %v672_v52 = vadd.f32 %v671_v51, %v670_v50 }
 0x366   : > { %v673_v53 = vadd.f32 %v672_v52, %v657_v45 }
 0x368   : > { %v674_v54 = vmax.f32 %v673_v53, 0.0 }
 0x36a   : > { %v678_v56 = vrot.slane %v674_v54, %v511_v41 }
 0x36c   : > { %v679_v57 = vmul.f32 %v678_v56, %v658_v55 }
 0x36e   : > { %v680_v58 = vsel %vm665_vm9, %v679_v57, 0.0 }
 0x36f   : > { %681 = vadd.xlane.f32.xlu0 %v680_v58 }
 0x3f8   : > { %v682_v60 = vpop.xlane.xlu0 %681 }
 0x3f9   : > { %v683_v61 = vadd.f32 %v682_v60, %v659_v59 }
 0x3fb   : > { %v768_v62 = vmul.f32 -1.442695, %v683_v61 }
 0x3fd   : > { %790 = vpow2.f32 %v768_v62 }
 0x40a   : > { %v791_v63 = vpop.eup %790 }
 0x40b   : > { %v687_v2 = vadd.f32 1.0, %v791_v63 }
 0x40d   : > { %792 = vrcp.f32 %v687_v2 }
 0x41a   : > { %v793_v3 = vpop.eup %792 }
 0x41b   : > { %692 = vperm.xlu0 %789, %v793_v3  }
 0x496   : > { %v693_v4 = vpop.permute.xlu0 %692 }
 0x497   : > { %v695_v40 = vmul.f32 %v693_v4, %v654_v36  ;;  %v696_v41 = vmul.f32 %v693_v4, %v655_v37 }
 0x499   : > { %v697_v5 = vadd.f32 %v695_v40, %v883_v0  ;;  %v698_v7 = vadd.f32 %v696_v41, %v889_v1 }
 0x49b   : > { %699 = vst [vmem:[%s361_s11] sm:$0xff] %v697_v5  ;;  %700 = vst [vmem:[%s361_s11 + $0x8] sm:$0xff] %v698_v7 }
 0x49c PF: > { %s20_s13 = sadd.s32 1, %s800_s13  }
 0x49d   : > { %p17_p4 = scmp.ge.s32.totalorder %s20_s13, 4  }
 0x49f   :  { %19 = sbr.rel (!%p17_p4) target bundleno = 1 (0x1), region = 90 }

</bundles_post_ra>
